<compile_context>
chip_gen: v5e
topology: v5e:2x2
jax: 0.10.0
libtpu: 0.0.40
codegen_flags: <defaults>
</compile_context>

<pallas_src>
import jax
import jax.numpy as jnp
from jax import lax
from jax.experimental import pallas as pl
from jax.experimental.pallas import tpu as pltpu


# ------------------------------ fused kernel --------------------------------

def ensemble_fused_kernel(aligns_ref, adj_ref, rel_ref, gh_ref, lh_ref,
                          wgr_ref, bgr_ref, out_ref):
    # Per-grid-step (one batch element) views:
    #   adj/rel: [Ng, Ng]   gh: [Ng, H]   lh: [Nl, H]   aligns: [Ng, 1]
    #   wgr: [H, 2H] = [0.8*Wg | Wr]      bgr: [1, 2H] = [0.8*bg | br]
    Ng, H = gh_ref.shape[1], gh_ref.shape[2]
    Nl = lh_ref.shape[1]
    f32 = jnp.float32

    # ---- GCN message passing (f32; keeps the 1% relative-pos signal exact) --
    adj = adj_ref[0] + 0.01 * rel_ref[0]                        # [Ng, Ng]
    agg = jnp.dot(adj, gh_ref[0], preferred_element_type=f32)   # [Ng, H]

    # ---- Merged weight projection: one matmul feeds both branches ----------
    m = jnp.concatenate([agg, lh_ref[0]], axis=0)               # [Ng+Nl, H]
    proj = jnp.dot(m, wgr_ref[...], preferred_element_type=f32) + bgr_ref[...]
    gv = jnp.maximum(proj[:Ng, :H], 0.0)     # 0.8 blend already folded into Wg/bg
    # TODO(synk): a true recurrent (GRU/LSTM) rnn_encoder is sequential over
    #             time; approximated here by a per-timestep tanh projection.
    lv = 0.2 * jnp.tanh(proj[Ng:, H:])       # [Nl, H], 0.2 blend folded once (f32)

    # ---- torch.gather(lv, index=aligns, dim=1): Nl-step VPU select-and-add --
    # Exact f32 selection; no index clipping (matches torch.gather: indices
    # are assumed in range).
    aligns = aligns_ref[0]                                      # [Ng, 1] int32
    lgv = jnp.zeros((Ng, H), f32)
    for l in range(Nl):
        sel = aligns == l                                       # [Ng, 1]
        lgv = lgv + jnp.where(sel, lv[l:l + 1, :], 0.0)         # [Ng, H]

    out_ref[0] = gv + lgv


# ------------------------------ JAX wrappers ----------------------------------

def pack_params(params):
    """Done ONCE at parameter-init time (not per call): fold the 0.8 blend into
    the GCN projection (relu is positively homogeneous) and pack both
    projections into a single weight / bias so the kernel sees one matmul and
    two fewer DMAs."""
    wgr = jnp.concatenate([0.8 * params["wg"], params["wr"]], axis=1)   # [H, 2H]
    bgr = jnp.concatenate([0.8 * params["bg"], params["br"]], axis=1)   # [1, 2H]
    return {"wgr": wgr, "bgr": bgr}


def ensemble_encoder_forward(adjs, relative_pos, gh, lh, aligns, packed):
    """Pallas implementation of EnsembleEncoder.forward (single fused call,
    grid over batch)."""
    B, Ng, _ = adjs.shape
    H = gh.shape[-1]
    Nl = lh.shape[1]
    assert Nl >= Ng  # mirrors: assert lv.size(1) >= gv.size(1)

    # Indices presented sublane-oriented ([B, Ng, 1]) so the in-kernel compare
    # needs no lane->sublane relayout.
    aligns3 = aligns.reshape(B, Ng, 1).astype(jnp.int32)

    return pl.pallas_call(
        ensemble_fused_kernel,
        out_shape=jax.ShapeDtypeStruct((B, Ng, H), jnp.float32),
        grid=(B,),
        in_specs=[
            pl.BlockSpec((1, Ng, 1), lambda b: (b, 0, 0)),    # aligns (int32)
            pl.BlockSpec((1, Ng, Ng), lambda b: (b, 0, 0)),   # adjs
            pl.BlockSpec((1, Ng, Ng), lambda b: (b, 0, 0)),   # relative_pos
            pl.BlockSpec((1, Ng, H), lambda b: (b, 0, 0)),    # gh
            pl.BlockSpec((1, Nl, H), lambda b: (b, 0, 0)),    # lh
            pl.BlockSpec((H, 2 * H), lambda b: (0, 0)),       # packed weight
            pl.BlockSpec((1, 2 * H), lambda b: (0, 0)),       # packed bias
        ],
        out_specs=pl.BlockSpec((1, Ng, H), lambda b: (b, 0, 0)),
        compiler_params=pltpu.CompilerParams(
            dimension_semantics=("parallel",)),
    )(aligns3, adjs, relative_pos, gh, lh, packed["wgr"], packed["bgr"])


# Pure-JAX f32 reference (mirrors the PyTorch semantics) for validation.
def ensemble_encoder_ref(adjs, relative_pos, gh, lh, aligns, params):
    hi = lax.Precision.HIGHEST
    adj = adjs + 0.01 * relative_pos
    agg = jnp.einsum("bij,bjh->bih", adj, gh, precision=hi)
    gv = jnp.maximum(
        jnp.einsum("bnh,hk->bnk", agg, params["wg"], precision=hi)
        + params["bg"], 0.0)
    lv = jnp.tanh(
        jnp.einsum("bnh,hk->bnk", lh, params["wr"], precision=hi)
        + params["br"])
    idx = jnp.broadcast_to(aligns[..., None], aligns.shape + (gv.shape[-1],))
    lgv = jnp.take_along_axis(lv, idx, axis=1)
    return 0.8 * gv + 0.2 * lgv


# --------------------------------- driver ------------------------------------

if __name__ == "__main__":
    B, Ng, Nl, H = 2, 8, 16, 32

    key = jax.random.PRNGKey(0)
    k = jax.random.split(key, 8)

    adjs = (jax.random.uniform(k[0], (B, Ng, Ng)) < 0.4).astype(jnp.float32)
    relative_pos = jax.random.normal(k[1], (B, Ng, Ng), jnp.float32)
    gh = jax.random.normal(k[2], (B, Ng, H), jnp.float32)
    lh = jax.random.normal(k[3], (B, Nl, H), jnp.float32)
    aligns = jax.random.randint(k[4], (B, Ng), 0, Nl, dtype=jnp.int32)

    params = {
        "wg": jax.random.normal(k[5], (H, H), jnp.float32) * 0.1,
        "bg": jnp.zeros((1, H), jnp.float32),
        "wr": jax.random.normal(k[6], (H, H), jnp.float32) * 0.1,
        "br": jnp.zeros((1, H), jnp.float32),
    }
    packed = pack_params(params)   # one-time init, outside the per-call path

    out = ensemble_encoder_forward(adjs, relative_pos, gh, lh, aligns, packed)
    out = jax.block_until_ready(out)

    ref = ensemble_encoder_ref(adjs, relative_pos, gh, lh, aligns, params)
    assert out.shape == (B, Ng, H)
    # f32 end-to-end -> tight tolerance (only MXU f32 pass vs HIGHEST rounding).
    assert jnp.allclose(out, ref, atol=2e-3, rtol=2e-3), (
        float(jnp.max(jnp.abs(out - ref))))

    print("KERNEL_OK")
</pallas_src>

<mosaic_0001>
module attributes {stable_mosaic.version = 11 : i64} {
  func.func @ensemble_fused_kernel(%arg0: i32, %arg1: memref<1x8x1xi32, #tpu.memory_space<vmem>>, %arg2: memref<1x8x8xf32, #tpu.memory_space<vmem>>, %arg3: memref<1x8x8xf32, #tpu.memory_space<vmem>>, %arg4: memref<1x8x32xf32, #tpu.memory_space<vmem>>, %arg5: memref<1x16x32xf32, #tpu.memory_space<vmem>>, %arg6: memref<32x64xf32, #tpu.memory_space<vmem>>, %arg7: memref<1x64xf32, #tpu.memory_space<vmem>>, %arg8: memref<1x8x32xf32, #tpu.memory_space<vmem>>) attributes {dimension_semantics = [#tpu.dimension_semantics<parallel>], iteration_bounds = array<i64: 2>, scalar_prefetch = 0 : i64, scratch_operands = 0 : i64, tpu.core_type = #tpu.core_type<tc>, window_params = [{transform_indices = @transform_0, window_bounds = array<i64: 1, 8, 1>}, {transform_indices = @transform_1, window_bounds = array<i64: 1, 8, 8>}, {transform_indices = @transform_2, window_bounds = array<i64: 1, 8, 8>}, {transform_indices = @transform_3, window_bounds = array<i64: 1, 8, 32>}, {transform_indices = @transform_4, window_bounds = array<i64: 1, 16, 32>}, {pipeline_mode = #tpu.pipeline_mode<synchronous>, transform_indices = @transform_5, window_bounds = array<i64: 32, 64>}, {pipeline_mode = #tpu.pipeline_mode<synchronous>, transform_indices = @transform_6, window_bounds = array<i64: 1, 64>}, {transform_indices = @transform_7, window_bounds = array<i64: 1, 8, 32>}]} {
    %c0 = arith.constant 0 : index
    %c0_0 = arith.constant 0 : index
    %c0_1 = arith.constant 0 : index
    %0 = vector.load %arg2[%c0, %c0_0, %c0_1] : memref<1x8x8xf32, #tpu.memory_space<vmem>>, vector<1x8x8xf32>
    %1 = vector.shape_cast %0 : vector<1x8x8xf32> to vector<8x8xf32>
    %c0_2 = arith.constant 0 : index
    %c0_3 = arith.constant 0 : index
    %c0_4 = arith.constant 0 : index
    %2 = vector.load %arg3[%c0_2, %c0_3, %c0_4] : memref<1x8x8xf32, #tpu.memory_space<vmem>>, vector<1x8x8xf32>
    %3 = vector.shape_cast %2 : vector<1x8x8xf32> to vector<8x8xf32>
    %cst = arith.constant 0.00999999977 : f32
    %4 = vector.broadcast %cst : f32 to vector<8x8xf32>
    %5 = arith.mulf %4, %3 : vector<8x8xf32>
    %6 = arith.addf %1, %5 : vector<8x8xf32>
    %c0_5 = arith.constant 0 : index
    %c0_6 = arith.constant 0 : index
    %c0_7 = arith.constant 0 : index
    %7 = vector.load %arg4[%c0_5, %c0_6, %c0_7] : memref<1x8x32xf32, #tpu.memory_space<vmem>>, vector<1x8x32xf32>
    %8 = vector.shape_cast %7 : vector<1x8x32xf32> to vector<8x32xf32>
    %cst_8 = arith.constant dense<0.000000e+00> : vector<8x32xf32>
    %9 = tpu.matmul %6, %8, %cst_8 {dimension_numbers = #tpu.dot_dimension_numbers<[1], [0], [0], [1], [0, 0, 1, 1], [], []>} : vector<8x8xf32>, vector<8x32xf32>, vector<8x32xf32> -> vector<8x32xf32>
    %c0_9 = arith.constant 0 : index
    %c0_10 = arith.constant 0 : index
    %c0_11 = arith.constant 0 : index
    %10 = vector.load %arg5[%c0_9, %c0_10, %c0_11] : memref<1x16x32xf32, #tpu.memory_space<vmem>>, vector<1x16x32xf32>
    %11 = vector.shape_cast %10 : vector<1x16x32xf32> to vector<16x32xf32>
    %12 = tpu.concatenate %9, %11 in 0 : vector<8x32xf32>, vector<16x32xf32> -> vector<24x32xf32>
    %c0_12 = arith.constant 0 : index
    %c0_13 = arith.constant 0 : index
    %13 = vector.load %arg6[%c0_12, %c0_13] : memref<32x64xf32, #tpu.memory_space<vmem>>, vector<32x64xf32>
    %cst_14 = arith.constant dense<0.000000e+00> : vector<24x64xf32>
    %14 = tpu.matmul %12, %13, %cst_14 {dimension_numbers = #tpu.dot_dimension_numbers<[1], [0], [0], [1], [0, 0, 1, 1], [], []>} : vector<24x32xf32>, vector<32x64xf32>, vector<24x64xf32> -> vector<24x64xf32>
    %c0_15 = arith.constant 0 : index
    %c0_16 = arith.constant 0 : index
    %15 = vector.load %arg7[%c0_15, %c0_16] : memref<1x64xf32, #tpu.memory_space<vmem>>, vector<1x64xf32>
    %16 = vector.broadcast %15 : vector<1x64xf32> to vector<24x64xf32>
    %17 = arith.addf %14, %16 : vector<24x64xf32>
    %18 = vector.extract_strided_slice %17 {offsets = [0, 0], sizes = [8, 32], strides = [1, 1]} : vector<24x64xf32> to vector<8x32xf32>
    %cst_17 = arith.constant 0.000000e+00 : f32
    %19 = vector.broadcast %cst_17 : f32 to vector<8x32xf32>
    %20 = arith.maximumf %18, %19 : vector<8x32xf32>
    %21 = vector.extract_strided_slice %17 {offsets = [8, 32], sizes = [16, 32], strides = [1, 1]} : vector<24x64xf32> to vector<16x32xf32>
    %22 = math.tanh %21 : vector<16x32xf32>
    %cst_18 = arith.constant 2.000000e-01 : f32
    %23 = vector.broadcast %cst_18 : f32 to vector<16x32xf32>
    %24 = arith.mulf %23, %22 : vector<16x32xf32>
    %c0_19 = arith.constant 0 : index
    %c0_20 = arith.constant 0 : index
    %c0_21 = arith.constant 0 : index
    %25 = vector.load %arg1[%c0_19, %c0_20, %c0_21] : memref<1x8x1xi32, #tpu.memory_space<vmem>>, vector<1x8x1xi32>
    %26 = vector.shape_cast %25 : vector<1x8x1xi32> to vector<8x1xi32>
    %cst_22 = arith.constant 0.000000e+00 : f32
    %27 = vector.broadcast %cst_22 : f32 to vector<8x32xf32>
    %c0_i32 = arith.constant 0 : i32
    %28 = vector.broadcast %c0_i32 : i32 to vector<8x1xi32>
    %29 = arith.cmpi eq, %26, %28 : vector<8x1xi32>
    %30 = vector.extract_strided_slice %24 {offsets = [0, 0], sizes = [1, 32], strides = [1, 1]} : vector<16x32xf32> to vector<1x32xf32>
    %cst_23 = arith.constant 0.000000e+00 : f32
    %31 = vector.shape_cast %29 : vector<8x1xi1> to vector<8x1xi1>
    %32 = vector.broadcast %31 : vector<8x1xi1> to vector<8x32xi1>
    %33 = vector.shape_cast %30 : vector<1x32xf32> to vector<1x32xf32>
    %34 = vector.broadcast %33 : vector<1x32xf32> to vector<8x32xf32>
    %35 = vector.broadcast %cst_23 : f32 to vector<8x32xf32>
    %36 = arith.select %32, %34, %35 : vector<8x32xi1>, vector<8x32xf32>
    %37 = arith.addf %27, %36 : vector<8x32xf32>
    %c1_i32 = arith.constant 1 : i32
    %38 = vector.broadcast %c1_i32 : i32 to vector<8x1xi32>
    %39 = arith.cmpi eq, %26, %38 : vector<8x1xi32>
    %40 = vector.extract_strided_slice %24 {offsets = [1, 0], sizes = [1, 32], strides = [1, 1]} : vector<16x32xf32> to vector<1x32xf32>
    %cst_24 = arith.constant 0.000000e+00 : f32
    %41 = vector.shape_cast %39 : vector<8x1xi1> to vector<8x1xi1>
    %42 = vector.broadcast %41 : vector<8x1xi1> to vector<8x32xi1>
    %43 = vector.shape_cast %40 : vector<1x32xf32> to vector<1x32xf32>
    %44 = vector.broadcast %43 : vector<1x32xf32> to vector<8x32xf32>
    %45 = vector.broadcast %cst_24 : f32 to vector<8x32xf32>
    %46 = arith.select %42, %44, %45 : vector<8x32xi1>, vector<8x32xf32>
    %47 = arith.addf %37, %46 : vector<8x32xf32>
    %c2_i32 = arith.constant 2 : i32
    %48 = vector.broadcast %c2_i32 : i32 to vector<8x1xi32>
    %49 = arith.cmpi eq, %26, %48 : vector<8x1xi32>
    %50 = vector.extract_strided_slice %24 {offsets = [2, 0], sizes = [1, 32], strides = [1, 1]} : vector<16x32xf32> to vector<1x32xf32>
    %cst_25 = arith.constant 0.000000e+00 : f32
    %51 = vector.shape_cast %49 : vector<8x1xi1> to vector<8x1xi1>
    %52 = vector.broadcast %51 : vector<8x1xi1> to vector<8x32xi1>
    %53 = vector.shape_cast %50 : vector<1x32xf32> to vector<1x32xf32>
    %54 = vector.broadcast %53 : vector<1x32xf32> to vector<8x32xf32>
    %55 = vector.broadcast %cst_25 : f32 to vector<8x32xf32>
    %56 = arith.select %52, %54, %55 : vector<8x32xi1>, vector<8x32xf32>
    %57 = arith.addf %47, %56 : vector<8x32xf32>
    %c3_i32 = arith.constant 3 : i32
    %58 = vector.broadcast %c3_i32 : i32 to vector<8x1xi32>
    %59 = arith.cmpi eq, %26, %58 : vector<8x1xi32>
    %60 = vector.extract_strided_slice %24 {offsets = [3, 0], sizes = [1, 32], strides = [1, 1]} : vector<16x32xf32> to vector<1x32xf32>
    %cst_26 = arith.constant 0.000000e+00 : f32
    %61 = vector.shape_cast %59 : vector<8x1xi1> to vector<8x1xi1>
    %62 = vector.broadcast %61 : vector<8x1xi1> to vector<8x32xi1>
    %63 = vector.shape_cast %60 : vector<1x32xf32> to vector<1x32xf32>
    %64 = vector.broadcast %63 : vector<1x32xf32> to vector<8x32xf32>
    %65 = vector.broadcast %cst_26 : f32 to vector<8x32xf32>
    %66 = arith.select %62, %64, %65 : vector<8x32xi1>, vector<8x32xf32>
    %67 = arith.addf %57, %66 : vector<8x32xf32>
    %c4_i32 = arith.constant 4 : i32
    %68 = vector.broadcast %c4_i32 : i32 to vector<8x1xi32>
    %69 = arith.cmpi eq, %26, %68 : vector<8x1xi32>
    %70 = vector.extract_strided_slice %24 {offsets = [4, 0], sizes = [1, 32], strides = [1, 1]} : vector<16x32xf32> to vector<1x32xf32>
    %cst_27 = arith.constant 0.000000e+00 : f32
    %71 = vector.shape_cast %69 : vector<8x1xi1> to vector<8x1xi1>
    %72 = vector.broadcast %71 : vector<8x1xi1> to vector<8x32xi1>
    %73 = vector.shape_cast %70 : vector<1x32xf32> to vector<1x32xf32>
    %74 = vector.broadcast %73 : vector<1x32xf32> to vector<8x32xf32>
    %75 = vector.broadcast %cst_27 : f32 to vector<8x32xf32>
    %76 = arith.select %72, %74, %75 : vector<8x32xi1>, vector<8x32xf32>
    %77 = arith.addf %67, %76 : vector<8x32xf32>
    %c5_i32 = arith.constant 5 : i32
    %78 = vector.broadcast %c5_i32 : i32 to vector<8x1xi32>
    %79 = arith.cmpi eq, %26, %78 : vector<8x1xi32>
    %80 = vector.extract_strided_slice %24 {offsets = [5, 0], sizes = [1, 32], strides = [1, 1]} : vector<16x32xf32> to vector<1x32xf32>
    %cst_28 = arith.constant 0.000000e+00 : f32
    %81 = vector.shape_cast %79 : vector<8x1xi1> to vector<8x1xi1>
    %82 = vector.broadcast %81 : vector<8x1xi1> to vector<8x32xi1>
    %83 = vector.shape_cast %80 : vector<1x32xf32> to vector<1x32xf32>
    %84 = vector.broadcast %83 : vector<1x32xf32> to vector<8x32xf32>
    %85 = vector.broadcast %cst_28 : f32 to vector<8x32xf32>
    %86 = arith.select %82, %84, %85 : vector<8x32xi1>, vector<8x32xf32>
    %87 = arith.addf %77, %86 : vector<8x32xf32>
    %c6_i32 = arith.constant 6 : i32
    %88 = vector.broadcast %c6_i32 : i32 to vector<8x1xi32>
    %89 = arith.cmpi eq, %26, %88 : vector<8x1xi32>
    %90 = vector.extract_strided_slice %24 {offsets = [6, 0], sizes = [1, 32], strides = [1, 1]} : vector<16x32xf32> to vector<1x32xf32>
    %cst_29 = arith.constant 0.000000e+00 : f32
    %91 = vector.shape_cast %89 : vector<8x1xi1> to vector<8x1xi1>
    %92 = vector.broadcast %91 : vector<8x1xi1> to vector<8x32xi1>
    %93 = vector.shape_cast %90 : vector<1x32xf32> to vector<1x32xf32>
    %94 = vector.broadcast %93 : vector<1x32xf32> to vector<8x32xf32>
    %95 = vector.broadcast %cst_29 : f32 to vector<8x32xf32>
    %96 = arith.select %92, %94, %95 : vector<8x32xi1>, vector<8x32xf32>
    %97 = arith.addf %87, %96 : vector<8x32xf32>
    %c7_i32 = arith.constant 7 : i32
    %98 = vector.broadcast %c7_i32 : i32 to vector<8x1xi32>
    %99 = arith.cmpi eq, %26, %98 : vector<8x1xi32>
    %100 = vector.extract_strided_slice %24 {offsets = [7, 0], sizes = [1, 32], strides = [1, 1]} : vector<16x32xf32> to vector<1x32xf32>
    %cst_30 = arith.constant 0.000000e+00 : f32
    %101 = vector.shape_cast %99 : vector<8x1xi1> to vector<8x1xi1>
    %102 = vector.broadcast %101 : vector<8x1xi1> to vector<8x32xi1>
    %103 = vector.shape_cast %100 : vector<1x32xf32> to vector<1x32xf32>
    %104 = vector.broadcast %103 : vector<1x32xf32> to vector<8x32xf32>
    %105 = vector.broadcast %cst_30 : f32 to vector<8x32xf32>
    %106 = arith.select %102, %104, %105 : vector<8x32xi1>, vector<8x32xf32>
    %107 = arith.addf %97, %106 : vector<8x32xf32>
    %c8_i32 = arith.constant 8 : i32
    %108 = vector.broadcast %c8_i32 : i32 to vector<8x1xi32>
    %109 = arith.cmpi eq, %26, %108 : vector<8x1xi32>
    %110 = vector.extract_strided_slice %24 {offsets = [8, 0], sizes = [1, 32], strides = [1, 1]} : vector<16x32xf32> to vector<1x32xf32>
    %cst_31 = arith.constant 0.000000e+00 : f32
    %111 = vector.shape_cast %109 : vector<8x1xi1> to vector<8x1xi1>
    %112 = vector.broadcast %111 : vector<8x1xi1> to vector<8x32xi1>
    %113 = vector.shape_cast %110 : vector<1x32xf32> to vector<1x32xf32>
    %114 = vector.broadcast %113 : vector<1x32xf32> to vector<8x32xf32>
    %115 = vector.broadcast %cst_31 : f32 to vector<8x32xf32>
    %116 = arith.select %112, %114, %115 : vector<8x32xi1>, vector<8x32xf32>
    %117 = arith.addf %107, %116 : vector<8x32xf32>
    %c9_i32 = arith.constant 9 : i32
    %118 = vector.broadcast %c9_i32 : i32 to vector<8x1xi32>
    %119 = arith.cmpi eq, %26, %118 : vector<8x1xi32>
    %120 = vector.extract_strided_slice %24 {offsets = [9, 0], sizes = [1, 32], strides = [1, 1]} : vector<16x32xf32> to vector<1x32xf32>
    %cst_32 = arith.constant 0.000000e+00 : f32
    %121 = vector.shape_cast %119 : vector<8x1xi1> to vector<8x1xi1>
    %122 = vector.broadcast %121 : vector<8x1xi1> to vector<8x32xi1>
    %123 = vector.shape_cast %120 : vector<1x32xf32> to vector<1x32xf32>
    %124 = vector.broadcast %123 : vector<1x32xf32> to vector<8x32xf32>
    %125 = vector.broadcast %cst_32 : f32 to vector<8x32xf32>
    %126 = arith.select %122, %124, %125 : vector<8x32xi1>, vector<8x32xf32>
    %127 = arith.addf %117, %126 : vector<8x32xf32>
    %c10_i32 = arith.constant 10 : i32
    %128 = vector.broadcast %c10_i32 : i32 to vector<8x1xi32>
    %129 = arith.cmpi eq, %26, %128 : vector<8x1xi32>
    %130 = vector.extract_strided_slice %24 {offsets = [10, 0], sizes = [1, 32], strides = [1, 1]} : vector<16x32xf32> to vector<1x32xf32>
    %cst_33 = arith.constant 0.000000e+00 : f32
    %131 = vector.shape_cast %129 : vector<8x1xi1> to vector<8x1xi1>
    %132 = vector.broadcast %131 : vector<8x1xi1> to vector<8x32xi1>
    %133 = vector.shape_cast %130 : vector<1x32xf32> to vector<1x32xf32>
    %134 = vector.broadcast %133 : vector<1x32xf32> to vector<8x32xf32>
    %135 = vector.broadcast %cst_33 : f32 to vector<8x32xf32>
    %136 = arith.select %132, %134, %135 : vector<8x32xi1>, vector<8x32xf32>
    %137 = arith.addf %127, %136 : vector<8x32xf32>
    %c11_i32 = arith.constant 11 : i32
    %138 = vector.broadcast %c11_i32 : i32 to vector<8x1xi32>
    %139 = arith.cmpi eq, %26, %138 : vector<8x1xi32>
    %140 = vector.extract_strided_slice %24 {offsets = [11, 0], sizes = [1, 32], strides = [1, 1]} : vector<16x32xf32> to vector<1x32xf32>
    %cst_34 = arith.constant 0.000000e+00 : f32
    %141 = vector.shape_cast %139 : vector<8x1xi1> to vector<8x1xi1>
    %142 = vector.broadcast %141 : vector<8x1xi1> to vector<8x32xi1>
    %143 = vector.shape_cast %140 : vector<1x32xf32> to vector<1x32xf32>
    %144 = vector.broadcast %143 : vector<1x32xf32> to vector<8x32xf32>
    %145 = vector.broadcast %cst_34 : f32 to vector<8x32xf32>
    %146 = arith.select %142, %144, %145 : vector<8x32xi1>, vector<8x32xf32>
    %147 = arith.addf %137, %146 : vector<8x32xf32>
    %c12_i32 = arith.constant 12 : i32
    %148 = vector.broadcast %c12_i32 : i32 to vector<8x1xi32>
    %149 = arith.cmpi eq, %26, %148 : vector<8x1xi32>
    %150 = vector.extract_strided_slice %24 {offsets = [12, 0], sizes = [1, 32], strides = [1, 1]} : vector<16x32xf32> to vector<1x32xf32>
    %cst_35 = arith.constant 0.000000e+00 : f32
    %151 = vector.shape_cast %149 : vector<8x1xi1> to vector<8x1xi1>
    %152 = vector.broadcast %151 : vector<8x1xi1> to vector<8x32xi1>
    %153 = vector.shape_cast %150 : vector<1x32xf32> to vector<1x32xf32>
    %154 = vector.broadcast %153 : vector<1x32xf32> to vector<8x32xf32>
    %155 = vector.broadcast %cst_35 : f32 to vector<8x32xf32>
    %156 = arith.select %152, %154, %155 : vector<8x32xi1>, vector<8x32xf32>
    %157 = arith.addf %147, %156 : vector<8x32xf32>
    %c13_i32 = arith.constant 13 : i32
    %158 = vector.broadcast %c13_i32 : i32 to vector<8x1xi32>
    %159 = arith.cmpi eq, %26, %158 : vector<8x1xi32>
    %160 = vector.extract_strided_slice %24 {offsets = [13, 0], sizes = [1, 32], strides = [1, 1]} : vector<16x32xf32> to vector<1x32xf32>
    %cst_36 = arith.constant 0.000000e+00 : f32
    %161 = vector.shape_cast %159 : vector<8x1xi1> to vector<8x1xi1>
    %162 = vector.broadcast %161 : vector<8x1xi1> to vector<8x32xi1>
    %163 = vector.shape_cast %160 : vector<1x32xf32> to vector<1x32xf32>
    %164 = vector.broadcast %163 : vector<1x32xf32> to vector<8x32xf32>
    %165 = vector.broadcast %cst_36 : f32 to vector<8x32xf32>
    %166 = arith.select %162, %164, %165 : vector<8x32xi1>, vector<8x32xf32>
    %167 = arith.addf %157, %166 : vector<8x32xf32>
    %c14_i32 = arith.constant 14 : i32
    %168 = vector.broadcast %c14_i32 : i32 to vector<8x1xi32>
    %169 = arith.cmpi eq, %26, %168 : vector<8x1xi32>
    %170 = vector.extract_strided_slice %24 {offsets = [14, 0], sizes = [1, 32], strides = [1, 1]} : vector<16x32xf32> to vector<1x32xf32>
    %cst_37 = arith.constant 0.000000e+00 : f32
    %171 = vector.shape_cast %169 : vector<8x1xi1> to vector<8x1xi1>
    %172 = vector.broadcast %171 : vector<8x1xi1> to vector<8x32xi1>
    %173 = vector.shape_cast %170 : vector<1x32xf32> to vector<1x32xf32>
    %174 = vector.broadcast %173 : vector<1x32xf32> to vector<8x32xf32>
    %175 = vector.broadcast %cst_37 : f32 to vector<8x32xf32>
    %176 = arith.select %172, %174, %175 : vector<8x32xi1>, vector<8x32xf32>
    %177 = arith.addf %167, %176 : vector<8x32xf32>
    %c15_i32 = arith.constant 15 : i32
    %178 = vector.broadcast %c15_i32 : i32 to vector<8x1xi32>
    %179 = arith.cmpi eq, %26, %178 : vector<8x1xi32>
    %180 = vector.extract_strided_slice %24 {offsets = [15, 0], sizes = [1, 32], strides = [1, 1]} : vector<16x32xf32> to vector<1x32xf32>
    %cst_38 = arith.constant 0.000000e+00 : f32
    %181 = vector.shape_cast %179 : vector<8x1xi1> to vector<8x1xi1>
    %182 = vector.broadcast %181 : vector<8x1xi1> to vector<8x32xi1>
    %183 = vector.shape_cast %180 : vector<1x32xf32> to vector<1x32xf32>
    %184 = vector.broadcast %183 : vector<1x32xf32> to vector<8x32xf32>
    %185 = vector.broadcast %cst_38 : f32 to vector<8x32xf32>
    %186 = arith.select %182, %184, %185 : vector<8x32xi1>, vector<8x32xf32>
    %187 = arith.addf %177, %186 : vector<8x32xf32>
    %188 = arith.addf %20, %187 : vector<8x32xf32>
    %c0_39 = arith.constant 0 : index
    %c0_40 = arith.constant 0 : index
    %c0_41 = arith.constant 0 : index
    %189 = vector.load %arg8[%c0_39, %c0_40, %c0_41] : memref<1x8x32xf32, #tpu.memory_space<vmem>>, vector<1x8x32xf32>
    %190 = vector.shape_cast %189 : vector<1x8x32xf32> to vector<8x32xf32>
    %191 = vector.shape_cast %188 : vector<8x32xf32> to vector<1x8x32xf32>
    tpu.vector_store %arg8[%c0_39, %c0_40, %c0_41], %191 {strides = array<i32>} : memref<1x8x32xf32, #tpu.memory_space<vmem>>, vector<1x8x32xf32>,
    return
  }
  func.func @transform_0(%arg0: i32) -> (i32, i32, i32) {
    %c0_i32 = arith.constant 0 : i32
    %c0_i32_0 = arith.constant 0 : i32
    %c0_i32_1 = arith.constant 0 : i32
    return %arg0, %c0_i32, %c0_i32_0 : i32, i32, i32
  }
  func.func @transform_1(%arg0: i32) -> (i32, i32, i32) {
    %c0_i32 = arith.constant 0 : i32
    %c0_i32_0 = arith.constant 0 : i32
    %c0_i32_1 = arith.constant 0 : i32
    return %arg0, %c0_i32, %c0_i32_0 : i32, i32, i32
  }
  func.func @transform_2(%arg0: i32) -> (i32, i32, i32) {
    %c0_i32 = arith.constant 0 : i32
    %c0_i32_0 = arith.constant 0 : i32
    %c0_i32_1 = arith.constant 0 : i32
    return %arg0, %c0_i32, %c0_i32_0 : i32, i32, i32
  }
  func.func @transform_3(%arg0: i32) -> (i32, i32, i32) {
    %c0_i32 = arith.constant 0 : i32
    %c0_i32_0 = arith.constant 0 : i32
    %c0_i32_1 = arith.constant 0 : i32
    return %arg0, %c0_i32, %c0_i32_0 : i32, i32, i32
  }
  func.func @transform_4(%arg0: i32) -> (i32, i32, i32) {
    %c0_i32 = arith.constant 0 : i32
    %c0_i32_0 = arith.constant 0 : i32
    %c0_i32_1 = arith.constant 0 : i32
    return %arg0, %c0_i32, %c0_i32_0 : i32, i32, i32
  }
  func.func @transform_5(%arg0: i32) -> (i32, i32) {
    %c0_i32 = arith.constant 0 : i32
    %c0_i32_0 = arith.constant 0 : i32
    %c0_i32_1 = arith.constant 0 : i32
    return %c0_i32, %c0_i32_0 : i32, i32
  }
  func.func @transform_6(%arg0: i32) -> (i32, i32) {
    %c0_i32 = arith.constant 0 : i32
    %c0_i32_0 = arith.constant 0 : i32
    %c0_i32_1 = arith.constant 0 : i32
    return %c0_i32, %c0_i32_0 : i32, i32
  }
  func.func @transform_7(%arg0: i32) -> (i32, i32, i32) {
    %c0_i32 = arith.constant 0 : i32
    %c0_i32_0 = arith.constant 0 : i32
    %c0_i32_1 = arith.constant 0 : i32
    return %arg0, %c0_i32, %c0_i32_0 : i32, i32, i32
  }
}

</mosaic_0001>

<bundles_post_ra>
// kernel: tpu_custom_call.1
= control target key start
LH: loop header
LB: loop body
LE: loop exit
PB: predicated region body
PF: predicated region fallthrough
CT: control target
= control target key end

     0   :  { %s1459_s0 = inlined_call_operand.vmem [shape: s32[2,8,1], index: 0, kind: input, shape index: {}]   ;;  %s1460_s1 = inlined_call_operand.vmem [shape: f32[2,8,8], index: 1, kind: input, shape index: {}]   ;;  %s1461_s2 = inlined_call_operand.hbm [shape: f32[2,8,8], index: 2, kind: input, shape index: {}]   ;;  %s1462_s3 = inlined_call_operand.hbm [shape: f32[2,8,32], index: 3, kind: input, shape index: {}]   ;;  %s1463_s4 = inlined_call_operand.hbm [shape: f32[2,16,32], index: 4, kind: input, shape index: {}]   ;;  %s1464_s5 = inlined_call_operand.hbm [shape: f32[32,64], index: 5, kind: input, shape index: {}]   ;;  %s1465_s6 = inlined_call_operand.vmem [shape: f32[1,64], index: 6, kind: input, shape index: {}]   ;;  %s1466_s7 = inlined_call_operand.hbm [shape: f32[2,8,32], index: 7, kind: output, shape index: {}]  }
   0x1   :  { %1473 = sst [smem:[#allocation20_spill]] %s1462_s3 }
   0x2   :  { %1474 = sst [smem:[#allocation21_spill]] %s1464_s5 }
   0x3   :  { %12 = vsyncpa [#allocation3], 0 }
   0x4   :  { %14 = vsyncpa [#allocation3 + $0x1], 0 }
   0x5   :  { %15 = vsyncpa [#allocation6], 0 }
   0x6   :  { %17 = vsyncpa [#allocation6 + $0x1], 0 }
   0x7   :  { %18 = vsyncpa [#allocation9], 0 }
   0x8   :  { %19 = vsyncpa [#allocation4], 0 }
   0x9   :  { %21 = vsyncpa [#allocation4 + $0x1], 0  ;;  %s1175_s24 = smov 0   ;;  %s1177_s25 = smov 0  }
   0xa   :  { %s1179_s26 = smov 0   ;;  %s1181_s27 = smov 0  }
   0xb LB: > { %1475 = sst [smem:[#allocation15_spill]] %s1116_s24  ;;  %s1196_s28 = sadd.s32 4294967295, %s1128_s27   ;;  %s1128_s27 = sphi %s1181_s27, %s1492_s27   ;;  %s1124_s26 = sphi %s1179_s26, %s1494_s26   ;;  %s1120_s25 = sphi %s1177_s25, %s1496_s25   ;;  %s1116_s24 = sphi %s1175_s24, %s1495_s24  }
   0xc   : > { %1476 = sst [smem:[#allocation16_spill]] %s1124_s26  ;;  %s819_s29 = sadd.s32 4294967294, %s1128_s27  }
   0xd   : > { %s1200_s30 = sadd.s32 1, %s1128_s27   ;;  %s86_s8 = sadd.s32 1, %s1124_s26 }
   0xe   : > { %1477 = sst [smem:[#allocation17_spill]] %s1200_s30  ;;  %s83_s9 = ssub.s32 %s1128_s27, %s1200_s30 }
   0xf   : > { %p93_p0 = scmp.ne.s32.totalorder %s1124_s26, %s1120_s25  ;;  %p84_p1 = scmp.eq.s32.totalorder %s83_s9, 0 }
  0x10   : > { %p94_p2 = scmp.eq.s32.totalorder %s1128_s27, 0  ;;  %p99_p3 = scmp.ne.s32.totalorder %s1120_s25, %s1116_s24 }
  0x11   : > { %p217_p4 = scmp.eq.s32.totalorder %s1196_s28, 1  ;;  %p223_p7 = scmp.eq.s32.totalorder %s819_s29, 1 }
  0x12   : > { %s1212_s10 = scalar_select %p84_p1, %s1124_s26, %s86_s8  }
  0x13   : > { %p95_p5 = por %p94_p2, %p93_p0  ;;  %p1214_p6 = por %p217_p4, %p93_p0 }
  0x14   : > { %1478 = sst [smem:[#allocation18_spill]] %s1212_s10  ;;  %p886_p9 = scmp.lt.s32.totalorder %s1128_s27, 2 }
  0x15   : > { %p1223_p10 = por %p223_p7, %p99_p3  ;;  %s1228_s13 = sand.u32 1, %s1124_s26  }
  0x16   : > { %s1467_s14 = sshll.u32 %s1228_s13, 3  ;;  %s824_s15 = sshll.u32 %s1128_s27, 3 }
  0x17   : > { %s1480_s12 = scalar_select %p1223_p10, 1, 0 }
  0x18   : > { %p1232_p11 = pnand %p886_p9, %p95_p5  ;;  %s293_s17 = sand.u32 1, %s1128_s27  }
  0x19   : > { %1481 = sst [smem:[#allocation19_spill]] %s1480_s12  ;;  %s297_s22 = scalar_lea.vmem [#allocation5], %s1467_s14 }
  0x1a   : > { %s1483_s3 = sld [smem:[#allocation20_spill]]  ;;  %s305_s23 = sshll.u32 %s297_s22, 4  ;;  %s306_s23 = int_to_ptr.vmem [resolvable:$true] %s305_s23 }
  0x1b   : > { %s1244_s29 = scalar_lea.sflag [#allocation6], %s293_s17  ;;  %p938_p13 = pneg %p1232_p11 }
  0x20   : > { %s301_s20 = scalar_lea.hbm %s1483_s3, %s824_s15 }
  0x21   : > { %s303_s21 = sshll.u32 %s301_s20, 4  ;;  %s941_s20 = scalar_lea.hbm %s1483_s3, 16  ;;  %s304_s21 = int_to_ptr.hbm [resolvable:$true] %s303_s21 }
  0x22   : > { %s934_s8 = sshra.s32 %s304_s21, 4  ;;  %s935_s8 = int_to_ptr.hbm [resolvable:$true] %s934_s8 }
  0x23   : > { %s936_s9 = scalar_lea.hbm %s935_s8, 8  ;;  %p942_p2 = scmp.lt.s32.totalorder %s935_s8, %s1483_s3 }
  0x24   : > { %p937_p12 = scmp.ne.s32.totalorder %s935_s8, %s936_s9  ;;  %p943_p4 = scmp.lt.s32.totalorder %s941_s20, %s936_s9 }
  0x26   : > { %p939_p0 = pnand %p938_p13, %p937_p12  ;;  %p944_p5 = por %p943_p4, %p942_p2 }
  0x28   : > { %p940_p1 = pneg %p939_p0 }
  0x2a   : > { %p945_p7 = pnand %p944_p5, %p940_p1 }
  0x2c   : > { %948 = shalt.err (!%p945_p7)
}
  0x2d   : > { %877 = dma.hbm_to_vmem [thread:$0]  (!%p1232_p11), %s304_s21, 128, %s306_s23, %s1244_s29  }
  0x2e   : > { %s827_s17 = sshll.u32 %s1228_s13, 4  ;;  %p100_p9 = scmp.eq.s32.totalorder %s1196_s28, 0 }
  0x2f   : > { %p820_p12 = scmp.ge.s32.totalorder %s1128_s27, 1  ;;  %s1272_s8 = scalar_lea.vmem [#allocation7], %s827_s17 }
  0x30   : > { %p1268_p0 = por %p100_p9, %p99_p3  ;;  %p230_p1 = scmp.lt.s32.totalorder %s1128_s27, 3 }
  0x31   : > { %s1485_s5 = sld [smem:[#allocation21_spill]]  ;;  %s1130_s20 = smov [#allocation8]  }
  0x32   : > { %p1279_p2 = pnand %p820_p12, %p230_p1  ;;  %s243_s22 = sshll.u32 %s1130_s20, 4  ;;  %s244_s22 = int_to_ptr.vmem [resolvable:$true] %s243_s22 }
  0x33   : > { %s282_s18 = scalar_lea.hbm %s1461_s2, %s824_s15  ;;  %s1487_s19 = sshll.u32 %s1228_s13, 3 }
  0x34   : > { %p867_p3 = pneg %p1279_p2  ;;  %s278_s3 = scalar_lea.vmem [#allocation2], %s1487_s19 }
  0x35   : > { %s284_s10 = sshll.u32 %s282_s18, 4  ;;  %s1131_s26 = smov 128   ;;  %s285_s10 = int_to_ptr.hbm [resolvable:$true] %s284_s10 }
  0x36   : > { %p868_p4 = pnand %p867_p3, %p100_p9  ;;  %s1132_s30 = smov 8  }
  0x37   : > { %s241_s21 = sshll.u32 %s1485_s5, 4  ;;  %s286_s5 = sshll.u32 %s278_s3, 4  ;;  %s242_s21 = int_to_ptr.hbm [resolvable:$true] %s241_s21  ;;  %s287_s5 = int_to_ptr.vmem [resolvable:$true] %s286_s5 }
  0x38   : > { %870 = dma.hbm_to_vmem [thread:$0]  (!%p868_p4), %s242_s21, 512, %s244_s22, [#allocation9], %s1131_s26, %s1131_s26, %s1132_s30  }
  0x39   : > { %s275_s20 = scalar_lea.sflag [#allocation3], %s1228_s13  ;;  %s994_s12 = sshra.s32 %s285_s10, 4  ;;  %s995_s12 = int_to_ptr.hbm [resolvable:$true] %s994_s12 }
  0x3a   : > { %s996_s24 = scalar_lea.hbm %s995_s12, 8  ;;  %s1001_s9 = scalar_lea.hbm %s1461_s2, 16 }
  0x3b   : > { %p997_p5 = scmp.ne.s32.totalorder %s995_s12, %s996_s24  ;;  %p1002_p1 = scmp.lt.s32.totalorder %s995_s12, %s1461_s2 }
  0x3c   : > { %p1003_p3 = scmp.lt.s32.totalorder %s1001_s9, %s996_s24 }
  0x3d   : > { %p999_p7 = pnand %p997_p5, %p938_p13 }
  0x3e   : > { %p1004_p4 = por %p1003_p3, %p1002_p1 }
  0x3f   : > { %p1000_p12 = pneg %p999_p7 }
  0x41   : > { %p1005_p8 = pnand %p1004_p4, %p1000_p12 }
  0x43   : > { %1008 = shalt.err (!%p1005_p8)
}
  0x44   : > { %874 = dma.hbm_to_vmem [thread:$0]  (!%p1232_p11), %s285_s10, 128, %s287_s5, %s275_s20  }
  0x45   : > { %s846_s13 = sshll.u32 %s1128_s27, 4  ;;  %s1488_s21 = sshll.u32 %s1272_s8, 4  ;;  %s325_s21 = int_to_ptr.vmem [resolvable:$true] %s1488_s21 }
  0x46   : > { %s321_s15 = scalar_lea.hbm %s1463_s4, %s846_s13  ;;  %s1031_s5 = scalar_lea.hbm %s1463_s4, 32 }
  0x47   : > { %s322_s3 = sshll.u32 %s321_s15, 4  ;;  %s323_s3 = int_to_ptr.hbm [resolvable:$true] %s322_s3 }
  0x48   : > { %s1024_s12 = sshra.s32 %s323_s3, 4  ;;  %s1025_s12 = int_to_ptr.hbm [resolvable:$true] %s1024_s12 }
  0x49   : > { %s1026_s24 = scalar_lea.hbm %s1025_s12, 16  ;;  %p1032_p12 = scmp.lt.s32.totalorder %s1025_s12, %s1463_s4 }
  0x4a   : > { %p1027_p5 = scmp.ne.s32.totalorder %s1025_s12, %s1026_s24  ;;  %p1033_p1 = scmp.lt.s32.totalorder %s1031_s5, %s1026_s24 }
  0x4c   : > { %p1029_p8 = pnand %p1027_p5, %p938_p13  ;;  %p1034_p3 = por %p1033_p1, %p1032_p12 }
  0x4e   : > { %p1030_p7 = pneg %p1029_p8 }
  0x50   : > { %p1035_p4 = pnand %p1034_p3, %p1030_p7 }
  0x52   : > { %1038 = shalt.err (!%p1035_p4)
}
  0x53   : > { %880 = dma.hbm_to_vmem [thread:$0]  (!%p1232_p11), %s323_s3, 256, %s325_s21, %s1244_s29, %s1131_s26, %s1131_s26, %s1132_s30  }
  0x54   : > { %336 = sbr.rel (%p1279_p2) target bundleno = 403 (0x193), region = 48  ;;  %s1333_s20 = sand.u32 (!%p1279_p2), 1, %s1120_s25  }
  0x55   : > { %s1336_s18 = sshll.u32 (!%p1279_p2), %s1333_s20, 3  ;;  %s339_s13 = scalar_lea.sflag (!%p1279_p2), [#allocation3], %s1333_s20 }
  0x56   : > { %s342_s22 = scalar_lea.vmem (!%p1279_p2), [#allocation2], %s1336_s18 }
  0x59   : > { %1099 = dma.done.wait (%p1268_p0), %s339_s13, 128  }
  0x5a   : > { %1101 = vsyncadd (%p1268_p0), %s339_s13, 4294967168  ;;  %s348_s26 = sand.u32 1, %s1196_s28   ;;  %s352_s16 = scalar_lea.vmem [#allocation5], %s1336_s18 }
  0x5b   : > { %s349_s30 = scalar_lea.sflag [#allocation6], %s348_s26 }
  0x5c   : > { %1103 = dma.done.wait (%p1268_p0), %s349_s30, 384  }
  0x5d   : > { %1105 = vsyncadd (%p1268_p0), %s349_s30, 4294966912  ;;  %s833_s29 = sshll.u32 %s1333_s20, 4 }
  0x5e   : > { %s1351_s23 = scalar_lea.vmem [#allocation7], %s833_s29 }
  0x5f   : > { %1107 = dma.done.wait (%p100_p9), [#allocation9], 512  }
  0x60   : > { %1109 = vsyncadd (%p100_p9), [#allocation9], 4294966784  ;;  %p417_p11 = scmp.lt.s32.totalorder %s1196_s28, 1  ;;  %v1133_v0 = vmov 0   ;;  %v459_v1 = vld [vmem:[#allocation8 + $0x18] sm:$0xff]  ;;  %v458_v3 = vld [vmem:[#allocation8 + $0x10] sm:$0xff] }
  0x61   : > { %927 = vset.pattern.permute.xlu1 %v1133_v0  ;;  %926 = vset.pattern.permute.xlu0 %v1133_v0  ;;  %v457_v6 = vld [vmem:[#allocation8 + $0x8] sm:$0xff]  ;;  %v429_v7 = vld [vmem:[%s352_s16] sm:$0xff]  ;;  %v456_v9 = vld [vmem:[#allocation8] sm:$0xff]  ;;  %vm464_vm5 = vcmask 261120   ;;  %vm430_vm7 = vcmask 64512   ;;  %s1134_s10 = smov 96  }
  0x62   : > { %s1361_s14 = scalar_select %p417_p11, %s1196_s28, 1  ;;  %928 = vset.pattern.permute.xlu2 %v1133_v0  ;;  %847 = vmatpush.msra.mxu2 %v459_v1  ;;  %v454_v10 = vld [vmem:[%s1351_s23] sm:$0xff]  ;;  %v455_v11 = vld [vmem:[%s1351_s23 + $0x8] sm:$0xff] }
  0x63   : > { %848 = vmatpush.msra.mxu3 %v459_v1  ;;  %486 = vmatpush.msra.mxu1 %v459_v1  ;;  %v426_v12 = vld [vmem:[%s342_s22] sm:$0xff]  ;;  %s843_s8 = sshll.u32 %s1196_s28, 3  ;;  %s416_s30 = scalar_lea.vmem [#allocation10], %s1336_s18 }
  0x64   : > { %s836_s21 = sshll.u32 %s1361_s14, 3  ;;  %849 = vmatpush.msra.mxu2 %v458_v3  ;;  %449 = vmatpush.msra.mxu0 %v429_v7  ;;  %v427_v15 = vmul.f32 0.01, %v426_v12  ;;  %v1418_v33 = vld [vmem:[%s1465_s6] ss:$0 sm:$0xff]  ;;  %s667_s26 = scalar_lea.hbm %s1466_s7, %s843_s8 }
  0x65   : > { %s420_s3 = scalar_lea.vmem %s1459_s0, %s836_s21  ;;  %850 = vmatpush.msra.mxu3 %v458_v3  ;;  %s424_s9 = scalar_lea.vmem %s1460_s1, %s836_s21  ;;  %487 = vmatpush.msra.mxu1 %v458_v3 }
  0x66   : > { %v1370_v2 = vld [vmem:[%s420_s3] sm:$0xff]  ;;  %851 = vmatpush.msra.mxu2 %v457_v6  ;;  %s669_s16 = sshll.u32 %s416_s30, 4  ;;  %s671_s29 = sshll.u32 %s667_s26, 4  ;;  %s670_s16 = int_to_ptr.vmem [resolvable:$true] %s669_s16  ;;  %s672_s29 = int_to_ptr.hbm [resolvable:$true] %s671_s29 }
  0x67   : > { %vm524_vm0 = vcmp.eq.s32.totalorder %v1370_v2, 2  ;;  %vm506_vm1 = vcmp.eq.s32.totalorder %v1370_v2, 0  ;;  %vm542_vm2 = vcmp.eq.s32.totalorder %v1370_v2, 4  ;;  %vm533_vm3 = vcmp.eq.s32.totalorder %v1370_v2, 3  ;;  %852 = vmatpush.msra.mxu3 %v457_v6  ;;  %v425_v16 = vld [vmem:[%s424_s9] sm:$0xff]  ;;  %488 = vmatpush.msra.mxu1 %v457_v6  ;;  %s657_s23 = scalar_lea.sflag [#allocation4], %s1333_s20 }
  0x68   : > { %v525_v4 = vsel %vm524_vm0, 1, %v1133_v0  ;;  %v507_v5 = vsel %vm506_vm1, 1, %v1133_v0  ;;  %v543_v8 = vsel %vm542_vm2, 1, %v1133_v0  ;;  %vm515_vm4 = vcmp.eq.s32.totalorder %v1370_v2, 1  ;;  %853 = vmatpush.msra.mxu2 %v456_v9  ;;  %s1068_s14 = sshra.s32 %s672_s29, 4  ;;  %s1074_s18 = scalar_lea.hbm %s1466_s7, 16  ;;  %s1069_s14 = int_to_ptr.hbm [resolvable:$true] %s1068_s14 }
  0x69   : > { %527 = vperm.xlu1 %927, %v525_v4   ;;  %509 = vperm.xlu0 %926, %v507_v5   ;;  %vm551_vm6 = vcmp.eq.s32.totalorder %v1370_v2, 5  ;;  %v534_v13 = vsel %vm533_vm3, 1, %v1133_v0  ;;  %v516_v14 = vsel %vm515_vm4, 1, %v1133_v0  ;;  %v428_v18 = vadd.f32 %v427_v15, %v425_v16  ;;  %s1070_s28 = scalar_lea.hbm %s1069_s14, 8  ;;  %p1075_p2 = scmp.lt.s32.totalorder %s1069_s14, %s1466_s7 }
  0x6a   : > { %545 = vperm.xlu2 %928, %v543_v8   ;;  %854 = vmatpush.msra.mxu3 %v456_v9  ;;  %v552_v17 = vsel %vm551_vm6, 1, %v1133_v0  ;;  %vm569_vm8 = vcmp.eq.s32.totalorder %v1370_v2, 7  ;;  %vm560_vm9 = vcmp.eq.s32.totalorder %v1370_v2, 6  ;;  %vm578_vm10 = vcmp.eq.s32.totalorder %v1370_v2, 8  ;;  %p1071_p13 = scmp.ne.s32.totalorder %s1069_s14, %s1070_s28  ;;  %p1076_p5 = scmp.lt.s32.totalorder %s1074_s18, %s1070_s28 }
  0x6b   : > { %840 = vmatmul.msk.f32.vlgmr.msra.gmra.mxu2 %vm464_vm5, %v454_v10  ;;  %841 = vmatmul.msk.f32.vlgmr.msra.gmra.mxu3 %vm464_vm5, %v455_v11  ;;  %v570_v19 = vsel %vm569_vm8, 1, %v1133_v0  ;;  %v561_v20 = vsel %vm560_vm9, 1, %v1133_v0  ;;  %v579_v21 = vsel %vm578_vm10, 1, %v1133_v0  ;;  %vm596_vm11 = vcmp.eq.s32.totalorder %v1370_v2, 10 }
  0x6c   : > { %838 = vmatmul.msk.f32.vlgmr.msra.gmra.mxu0 %vm430_vm7, %v428_v18  ;;  %489 = vmatpush.msra.mxu1 %v456_v9  ;;  %vm587_vm12 = vcmp.eq.s32.totalorder %v1370_v2, 9  ;;  %vm605_vm13 = vcmp.eq.s32.totalorder %v1370_v2, 11  ;;  %v597_v22 = vsel %vm596_vm11, 1, %v1133_v0  ;;  %vm623_vm14 = vcmp.eq.s32.totalorder %v1370_v2, 13  ;;  %p1072_p9 = pnand %p1071_p13, %p1214_p6  ;;  %p1077_p8 = por %p1076_p5, %p1075_p2 }
  0x6d   : > { %v588_v23 = vsel %vm587_vm12, 1, %v1133_v0  ;;  %v606_v24 = vsel %vm605_vm13, 1, %v1133_v0  ;;  %vm614_vm15 = vcmp.eq.s32.totalorder %v1370_v2, 12  ;;  %vm632_vm0 = vcmp.eq.s32.totalorder %v1370_v2, 14 }
  0x6e   : > { %v624_v25 = vsel %vm623_vm14, 1, %v1133_v0  ;;  %v615_v26 = vsel %vm614_vm15, 1, %v1133_v0  ;;  %v633_v27 = vsel %vm632_vm0, 1, %v1133_v0  ;;  %vm641_vm1 = vcmp.eq.s32.totalorder %v1370_v2, 15  ;;  %p1073_p0 = pneg %p1072_p9 }
  0x6f   : > { %v642_v28 = vsel %vm641_vm1, 1, %v1133_v0 }
  0x70   : > { %p1078_p7 = pnand %p1077_p8, %p1073_p0 }
  0x71   : > { %536 = vperm.xlu1 %927, %v534_v13   ;;  %518 = vperm.xlu0 %926, %v516_v14  }
  0x72   : > { %554 = vperm.xlu2 %928, %v552_v17  }
  0x79   : > { %572 = vperm.xlu1 %927, %v570_v19   ;;  %563 = vperm.xlu0 %926, %v561_v20  }
  0x7a   : > { %581 = vperm.xlu2 %928, %v579_v21  }
  0x81   : > { %599 = vperm.xlu1 %927, %v597_v22   ;;  %590 = vperm.xlu0 %926, %v588_v23  }
  0x82   : > { %608 = vperm.xlu2 %928, %v606_v24  }
  0x89   : > { %626 = vperm.xlu1 %927, %v624_v25   ;;  %617 = vperm.xlu0 %926, %v615_v26  }
  0x8a   : > { %635 = vperm.xlu2 %928, %v633_v27  }
  0x91   : > { %644 = vperm.xlu0 %926, %v642_v28  }
  0xc4   : > { %v546_v31 = vpop.permute.xlu2 %545 }
  0xc5   : > { %vm547_vm7 = vcmp.eq.s32.totalorder %v546_v31, 1 }
  0xcc   : > { %v555_v39 = vpop.permute.xlu2 %554 }
  0xcd   : > { %vm556_vm8 = vcmp.eq.s32.totalorder %v555_v39, 1 }
  0xd4   : > { %v582_v52 = vpop.permute.xlu2 %581 }
  0xd5   : > { %vm583_vm11 = vcmp.eq.s32.totalorder %v582_v52, 1 }
  0xdb   : > { %v510_v29 = vpop.permute.xlu0 %509  ;;  %v528_v30 = vpop.permute.xlu1 %527 }
  0xdc   : > { %vm511_vm2 = vcmp.eq.s32.totalorder %v510_v29, 1  ;;  %vm529_vm4 = vcmp.eq.s32.totalorder %v528_v30, 1  ;;  %v609_v8 = vpop.permute.xlu2 %608 }
  0xdd   : > { %vm610_vm14 = vcmp.eq.s32.totalorder %v609_v8, 1 }
  0xe3   : > { %v519_v32 = vpop.permute.xlu0 %518  ;;  %v537_v37 = vpop.permute.xlu1 %536 }
  0xe4   : > { %vm520_vm3 = vcmp.eq.s32.totalorder %v519_v32, 1  ;;  %vm538_vm6 = vcmp.eq.s32.totalorder %v537_v37, 1  ;;  %v636_v26 = vpop.permute.xlu2 %635 }
  0xe5   : > { %vm637_vm1 = vcmp.eq.s32.totalorder %v636_v26, 1 }
  0xe9   : > { %v451_v36 = vpop.f32.mrf.mxu0 }
  0xea   : > { %839 = vmatmul.msk.f32.vlgmr.msra.gmra.mxu1 %vm464_vm5, %v451_v36 }
  0xeb   : > { %v564_v40 = vpop.permute.xlu0 %563  ;;  %v573_v47 = vpop.permute.xlu1 %572 }
  0xec   : > { %vm565_vm9 = vcmp.eq.s32.totalorder %v564_v40, 1  ;;  %vm574_vm10 = vcmp.eq.s32.totalorder %v573_v47, 1 }
  0xee   : > { %v494_v34 = vpop.f32.mrf.mxu2  ;;  %v497_v38 = vpop.f32.mrf.mxu3 }
  0xef   : > { %v495_v35 = vadd.f32 %v1418_v33, %v494_v34  ;;  %v498_v41 = vadd.f32 %v1418_v33, %v497_v38 }
  0xf1   : > { %930 = vtanh.f32 %v495_v35 }
  0xf2   : > { %932 = vtanh.f32 %v498_v41 }
  0xf3   : > { %v591_v53 = vpop.permute.xlu0 %590  ;;  %v600_v4 = vpop.permute.xlu1 %599 }
  0xf4   : > { %vm592_vm12 = vcmp.eq.s32.totalorder %v591_v53, 1  ;;  %vm601_vm13 = vcmp.eq.s32.totalorder %v600_v4, 1 }
  0xf7   : > { %v931_v42 = vpop.eup %930 }
  0xf8   : > { %v503_v43 = vmul.f32 0.2, %v931_v42  ;;  %v933_v56 = vpop.eup %932 }
  0xf9   : > { %v504_v61 = vmul.f32 0.2, %v933_v56 }
  0xfa   : > { %v512_v44 = vperm.slane %v503_v43, 0  ;;  %v521_v45 = vperm.slane %v503_v43, 1  ;;  %v530_v46 = vperm.slane %v503_v43, 2  ;;  %v539_v50 = vperm.slane %v503_v43, 3 }
  0xfb   : > { %v548_v55 = vperm.slane %v503_v43, 4  ;;  %v557_v59 = vperm.slane %v503_v43, 5  ;;  %v566_v63 = vperm.slane %v503_v43, 6  ;;  %v575_v2 = vperm.slane %v503_v43, 7  ;;  %v618_v11 = vpop.permute.xlu0 %617  ;;  %v627_v22 = vpop.permute.xlu1 %626 }
  0xfc   : > { %v513_v48 = vsel %vm511_vm2, %v512_v44, 0.0  ;;  %v522_v49 = vsel %vm520_vm3, %v521_v45, 0.0  ;;  %v531_v54 = vsel %vm529_vm4, %v530_v46, 0.0  ;;  %v540_v58 = vsel %vm538_vm6, %v539_v50, 0.0 }
  0xfd   : > { %v523_v51 = vadd.f32 %v522_v49, %v513_v48  ;;  %v549_v62 = vsel %vm547_vm7, %v548_v55, 0.0  ;;  %v558_v1 = vsel %vm556_vm8, %v557_v59, 0.0  ;;  %v567_v5 = vsel %vm565_vm9, %v566_v63, 0.0 }
  0xfe   : > { %v584_v6 = vperm.slane %v504_v61, 0  ;;  %v576_v9 = vsel %vm574_vm10, %v575_v2, 0.0  ;;  %v593_v10 = vperm.slane %v504_v61, 1  ;;  %v602_v13 = vperm.slane %v504_v61, 2 }
  0xff   : > { %v532_v57 = vadd.f32 %v531_v54, %v523_v51  ;;  %v611_v17 = vperm.slane %v504_v61, 3  ;;  %v620_v20 = vperm.slane %v504_v61, 4  ;;  %v629_v23 = vperm.slane %v504_v61, 5 }
 0x100   : > { %v585_v14 = vsel %vm583_vm11, %v584_v6, 0.0  ;;  %v594_v16 = vsel %vm592_vm12, %v593_v10, 0.0  ;;  %v603_v19 = vsel %vm601_vm13, %v602_v13, 0.0  ;;  %vm619_vm15 = vcmp.eq.s32.totalorder %v618_v11, 1 }
 0x101   : > { %v541_v60 = vadd.f32 %v540_v58, %v532_v57  ;;  %v612_v24 = vsel %vm610_vm14, %v611_v17, 0.0  ;;  %v638_v27 = vperm.slane %v504_v61, 6  ;;  %v621_v28 = vsel %vm619_vm15, %v620_v20, 0.0 }
 0x102   : > { %vm628_vm0 = vcmp.eq.s32.totalorder %v627_v22, 1  ;;  %v647_v32 = vperm.slane %v504_v61, 7 }
 0x103   : > { %v550_v0 = vadd.f32 %v549_v62, %v541_v60  ;;  %v645_v29 = vpop.permute.xlu0 %644  ;;  %v630_v31 = vsel %vm628_vm0, %v629_v23, 0.0  ;;  %v639_v35 = vsel %vm637_vm1, %v638_v27, 0.0 }
 0x104   : > { %vm646_vm2 = vcmp.eq.s32.totalorder %v645_v29, 1 }
 0x105   : > { %v559_v3 = vadd.f32 %v558_v1, %v550_v0  ;;  %v648_v37 = vsel %vm646_vm2, %v647_v32, 0.0 }
 0x107   : > { %v568_v7 = vadd.f32 %v567_v5, %v559_v3 }
 0x109   : > { %v577_v12 = vadd.f32 %v576_v9, %v568_v7 }
 0x10b   : > { %v586_v15 = vadd.f32 %v585_v14, %v577_v12 }
 0x10d   : > { %v595_v18 = vadd.f32 %v594_v16, %v586_v15 }
 0x10f   : > { %v604_v21 = vadd.f32 %v603_v19, %v595_v18 }
 0x111   : > { %v613_v25 = vadd.f32 %v612_v24, %v604_v21 }
 0x113   : > { %v622_v30 = vadd.f32 %v621_v28, %v613_v25 }
 0x115   : > { %v631_v34 = vadd.f32 %v630_v31, %v622_v30 }
 0x117   : > { %v640_v36 = vadd.f32 %v639_v35, %v631_v34 }
 0x119   : > { %v649_v38 = vadd.f32 %v648_v37, %v640_v36 }
 0x11b   : > { %651 = vrot.lane.b32.xlu1 %v649_v38, %s1134_s10 }
 0x167   : > { %v491_v39 = vpop.f32.mrf.mxu1 }
 0x168   : > { %v492_v40 = vadd.f32 %v1418_v33, %v491_v39 }
 0x16a   : > { %v500_v41 = vmax.f32 %v492_v40, 0.0 }
 0x18d   : > { %v652_v42 = vpop.permute.xlu1 %651 }
 0x18e   : > { %v654_v43 = vadd.f32 %v652_v42, %v500_v41 }
 0x190   : > { %655 = vst.msk [vmem:[%s416_s30] sm:$0xff] %vm464_vm5, %v654_v43 }
 0x191   : > { %1081 = shalt.err (!%p1078_p7)
}
 0x192   : > { %865 = dma.vmem_to_hbm [thread:$0]  (%p1214_p6), %s670_s16, 128, %s672_s29, %s657_s23  }
 0x193 PF: > { %s1489_s20 = sld [smem:[#allocation15_spill]]  ;;  %p1491_p12 = scmp.ge.s32.totalorder %s1128_s27, 2 }
 0x195   : > { %p882_p1 = pnand %p1491_p12, %p1223_p10 }
 0x197   : > { %p883_p3 = pneg %p882_p1 }
 0x199   : > { %s683_s24 = sand.u32 1, %s1489_s20  }
 0x19a   : > { %s684_s9 = scalar_lea.sflag [#allocation4], %s683_s24 }
 0x19b   : > { %1111 = dma.done.wait (%p883_p3), %s684_s9, 128  }
 0x19c   : > { %1113 = vsyncadd (%p883_p3), %s684_s9, 4294967168  ;;  %s1492_s27 = sld [smem:[#allocation17_spill]]  ;;  %s1495_s24 = smov %s1120_s25 }
 0x19d   : > { %s1493_s17 = sld [smem:[#allocation16_spill]] }
 0x19e   : > { %s1494_s26 = sld [smem:[#allocation18_spill]] }
 0x1a2   : > { %p24_p4 = scmp.ge.s32.totalorder %s1492_s27, 4  }
 0x1a3   : > { %s1496_s25 = smov %s1493_s17 }
 0x1a4   :  { %26 = sbr.rel (!%p24_p4) target bundleno = 11 (0xb), region = 127 }
 0x1a9   :  { %690 = vsyncpa [#allocation3], 1 }
 0x1aa   :  { %692 = vsyncpa [#allocation3 + $0x1], 1 }
 0x1ab   :  { %693 = vsyncpa [#allocation6], 1 }
 0x1ac   :  { %695 = vsyncpa [#allocation6 + $0x1], 1 }
 0x1ad   :  { %696 = vsyncpa [#allocation9], 1 }
 0x1ae   :  { %697 = vsyncpa [#allocation4], 1 }
 0x1af   :  { %699 = vsyncpa [#allocation4 + $0x1], 1 }

</bundles_post_ra>
